<compile_context>
chip_gen: v6e
topology: v6e:2x2x1
jax: 0.10.0
libtpu: 0.0.40
codegen_flags: <defaults>
</compile_context>

<pallas_src>
import functools

import jax
import jax.numpy as jnp
from jax.experimental import pallas as pl
from jax.experimental.pallas import tpu as pltpu


def _norm_kernel(x_ref, alpha_ref, bias_ref, o_ref, *, eps):
    """One (row_tile, d_model) tile: per-row mean / unbiased std / affine."""
    x = x_ref[...].astype(jnp.float32)
    d = x.shape[-1]
    mean = jnp.mean(x, axis=-1, keepdims=True)
    xc = x - mean
    # torch.std default is the unbiased estimator (divide by N-1).
    # d_model == 1 gives 0/0 -> NaN, matching torch's behaviour.
    var = jnp.sum(xc * xc, axis=-1, keepdims=True) / jnp.float32(d - 1)
    s = jnp.sqrt(var) + jnp.float32(eps)
    # EUP approximate reciprocal + one Newton step on the (rows, 1) vector to
    # recover essentially exact 1/s; both are off the VPU critical slot.
    inv = pl.reciprocal(s, approx=True)
    inv = inv * (jnp.float32(2.0) - s * inv)
    out = alpha_ref[...] * (xc * inv) + bias_ref[...]
    o_ref[...] = out.astype(o_ref.dtype)


def _round_up(v, m):
    return -(-v // m) * m


def _pick_row_tile(rows, d_model, itemsize, target_block_bytes):
    # bf16/f16 rows pack 2 per sublane -> keep tiles a multiple of 16 there.
    sublane = 16 if itemsize == 2 else 8
    rt = max(sublane, target_block_bytes // (itemsize * d_model))
    # Keep >= ~4 grid steps when rows allow it, so the "parallel" row axis can
    # be sharded across multiple TensorCores (v7x has 2 TCs/chip).
    rt = min(rt, max(sublane, -(-rows // 4)))
    rt = _round_up(rt, sublane)
    rt = min(rt, _round_up(rows, sublane))
    return max(rt, sublane)


def norm_pallas(x, alpha, bias, *, eps=1e-6, row_tile=None,
                target_block_bytes=4 << 20):
    """x: (..., d_model); alpha, bias: (d_model,). Returns same shape/dtype as x."""
    orig_shape = x.shape
    d_model = orig_shape[-1]
    x2 = x.reshape(-1, d_model)
    rows = x2.shape[0]
    itemsize = x2.dtype.itemsize

    if row_tile is None:
        row_tile = _pick_row_tile(rows, d_model, itemsize, target_block_bytes)

    # Ragged final block is handled by Pallas (padded boundary reads, masked
    # boundary writes); per-row reduction along d_model keeps padded rows out
    # of the valid rows' statistics.
    grid = (pl.cdiv(rows, row_tile),)

    # Pre-cast params to f32 once; the constant index_map keeps them resident
    # in VMEM across the whole grid.
    alpha2 = alpha.astype(jnp.float32).reshape(1, d_model)
    bias2 = bias.astype(jnp.float32).reshape(1, d_model)

    # VMEM budget: double-buffered in + out blocks (native dtype) plus the f32
    # intermediates inside the kernel.  Cap at 64 MiB so v7x (64 MiB VMEM/TC)
    # never over-subscribes; v5e/v6e (128 MiB) have ample headroom.
    block_native = row_tile * d_model * itemsize
    block_f32 = row_tile * d_model * 4
    vmem_limit = int(min(64 << 20,
                         max(32 << 20,
                             4 * block_native + 4 * block_f32 + (2 << 20))))

    cost = pl.CostEstimate(
        flops=8 * rows * d_model,
        transcendentals=2 * rows,  # sqrt + reciprocal per row
        bytes_accessed=2 * rows * d_model * itemsize + 2 * d_model * 4,
    )

    kernel = functools.partial(_norm_kernel, eps=eps)

    out = pl.pallas_call(
        kernel,
        out_shape=jax.ShapeDtypeStruct((rows, d_model), x.dtype),
        grid_spec=pltpu.PrefetchScalarGridSpec(
            num_scalar_prefetch=0,
            grid=grid,
            in_specs=[
                pl.BlockSpec((row_tile, d_model), lambda i: (i, 0)),
                pl.BlockSpec((1, d_model), lambda i: (0, 0)),
                pl.BlockSpec((1, d_model), lambda i: (0, 0)),
            ],
            out_specs=pl.BlockSpec((row_tile, d_model), lambda i: (i, 0)),
        ),
        compiler_params=pltpu.CompilerParams(
            dimension_semantics=("parallel",),
            vmem_limit_bytes=vmem_limit,
        ),
        cost_estimate=cost,
    )(x2, alpha2, bias2)

    return out.reshape(orig_shape)


def norm_reference(x, alpha, bias, eps=1e-6):
    """Pure-JAX reference matching the PyTorch forward exactly."""
    mean = jnp.mean(x, axis=-1, keepdims=True)
    std = jnp.std(x, axis=-1, keepdims=True, ddof=1)  # torch default: unbiased
    return alpha * (x - mean) / (std + eps) + bias


if __name__ == "__main__":
    key = jax.random.PRNGKey(0)
    batch, seq, d_model = 2, 8, 32

    # Deterministic parameter init, exactly like the module's __init__:
    # alpha = ones(d_model), bias = zeros(d_model)
    alpha = jnp.ones((d_model,), dtype=jnp.float32)
    bias = jnp.zeros((d_model,), dtype=jnp.float32)

    # Case 1: the standard small shape.
    x = jax.random.normal(key, (batch, seq, d_model), dtype=jnp.float32)
    out = jax.block_until_ready(norm_pallas(x, alpha, bias, eps=1e-6))
    ref = norm_reference(x, alpha, bias, eps=1e-6)
    assert out.shape == x.shape and out.dtype == x.dtype
    assert jnp.allclose(out, ref, atol=1e-4, rtol=1e-4), "mismatch vs reference"

    # Case 2: rows not a multiple of the tile (exercises the ragged final block).
    key2 = jax.random.PRNGKey(1)
    x2 = jax.random.normal(key2, (3, 5, d_model), dtype=jnp.float32)
    out2 = jax.block_until_ready(norm_pallas(x2, alpha, bias, eps=1e-6))
    ref2 = norm_reference(x2, alpha, bias, eps=1e-6)
    assert out2.shape == x2.shape and out2.dtype == x2.dtype
    assert jnp.allclose(out2, ref2, atol=1e-4, rtol=1e-4), "mismatch (ragged rows)"

    # Case 3: bf16 input with non-trivial affine params (different sublane packing).
    key3 = jax.random.PRNGKey(2)
    alpha3 = jax.random.normal(jax.random.PRNGKey(3), (d_model,), dtype=jnp.float32)
    bias3 = jax.random.normal(jax.random.PRNGKey(4), (d_model,), dtype=jnp.float32)
    x3 = jax.random.normal(key3, (4, 17, d_model), dtype=jnp.bfloat16)
    out3 = jax.block_until_ready(norm_pallas(x3, alpha3, bias3, eps=1e-6))
    ref3 = norm_reference(x3.astype(jnp.float32), alpha3, bias3, eps=1e-6)
    assert out3.shape == x3.shape and out3.dtype == x3.dtype
    assert jnp.allclose(out3.astype(jnp.float32), ref3, atol=3e-2, rtol=3e-2), \
        "mismatch (bf16)"

    print("KERNEL_OK")
</pallas_src>

<mosaic_0001>
module attributes {stable_mosaic.version = 11 : i64} {
  func.func @_norm_kernel(%arg0: i32, %arg1: memref<8x32xf32, #tpu.memory_space<vmem>>, %arg2: memref<1x32xf32, #tpu.memory_space<vmem>>, %arg3: memref<1x32xf32, #tpu.memory_space<vmem>>, %arg4: memref<8x32xf32, #tpu.memory_space<vmem>>) attributes {dimension_semantics = [#tpu.dimension_semantics<parallel>], iteration_bounds = array<i64: 2>, scalar_prefetch = 0 : i64, scratch_operands = 0 : i64, tpu.core_type = #tpu.core_type<tc>, window_params = [{transform_indices = @transform_0, window_bounds = array<i64: 8, 32>}, {pipeline_mode = #tpu.pipeline_mode<synchronous>, transform_indices = @transform_1, window_bounds = array<i64: 1, 32>}, {pipeline_mode = #tpu.pipeline_mode<synchronous>, transform_indices = @transform_2, window_bounds = array<i64: 1, 32>}, {transform_indices = @transform_3, window_bounds = array<i64: 8, 32>}]} {
    %c0 = arith.constant 0 : index
    %c0_0 = arith.constant 0 : index
    %0 = vector.load %arg1[%c0, %c0_0] : memref<8x32xf32, #tpu.memory_space<vmem>>, vector<8x32xf32>
    %cst = arith.constant dense<0.000000e+00> : vector<8xf32>
    %1 = vector.multi_reduction <add>, %0, %cst [1] : vector<8x32xf32> to vector<8xf32>
    %2 = vector.shape_cast %1 : vector<8xf32> to vector<8x1xf32>
    %cst_1 = arith.constant 3.200000e+01 : f32
    %3 = vector.broadcast %cst_1 : f32 to vector<8x1xf32>
    %4 = arith.divf %2, %3 : vector<8x1xf32>
    %5 = vector.broadcast %4 : vector<8x1xf32> to vector<8x32xf32>
    %6 = arith.subf %0, %5 : vector<8x32xf32>
    %7 = arith.mulf %6, %6 : vector<8x32xf32>
    %cst_2 = arith.constant dense<0.000000e+00> : vector<8xf32>
    %8 = vector.multi_reduction <add>, %7, %cst_2 [1] : vector<8x32xf32> to vector<8xf32>
    %9 = vector.shape_cast %8 : vector<8xf32> to vector<8x1xf32>
    %cst_3 = arith.constant 3.100000e+01 : f32
    %10 = vector.broadcast %cst_3 : f32 to vector<8x1xf32>
    %11 = arith.divf %9, %10 : vector<8x1xf32>
    %12 = math.sqrt %11 : vector<8x1xf32>
    %cst_4 = arith.constant 9.99999997E-7 : f32
    %13 = vector.broadcast %cst_4 : f32 to vector<8x1xf32>
    %14 = arith.addf %12, %13 : vector<8x1xf32>
    %15 = tpu.reciprocal %14 {approx = true} : vector<8x1xf32> -> vector<8x1xf32>
    %16 = arith.mulf %14, %15 : vector<8x1xf32>
    %cst_5 = arith.constant 2.000000e+00 : f32
    %17 = vector.broadcast %cst_5 : f32 to vector<8x1xf32>
    %18 = arith.subf %17, %16 : vector<8x1xf32>
    %19 = arith.mulf %15, %18 : vector<8x1xf32>
    %c0_6 = arith.constant 0 : index
    %c0_7 = arith.constant 0 : index
    %20 = vector.load %arg2[%c0_6, %c0_7] : memref<1x32xf32, #tpu.memory_space<vmem>>, vector<1x32xf32>
    %21 = vector.broadcast %19 : vector<8x1xf32> to vector<8x32xf32>
    %22 = arith.mulf %6, %21 : vector<8x32xf32>
    %23 = vector.broadcast %20 : vector<1x32xf32> to vector<8x32xf32>
    %24 = arith.mulf %23, %22 : vector<8x32xf32>
    %c0_8 = arith.constant 0 : index
    %c0_9 = arith.constant 0 : index
    %25 = vector.load %arg3[%c0_8, %c0_9] : memref<1x32xf32, #tpu.memory_space<vmem>>, vector<1x32xf32>
    %26 = vector.broadcast %25 : vector<1x32xf32> to vector<8x32xf32>
    %27 = arith.addf %24, %26 : vector<8x32xf32>
    %c0_10 = arith.constant 0 : index
    %c0_11 = arith.constant 0 : index
    %28 = vector.load %arg4[%c0_10, %c0_11] : memref<8x32xf32, #tpu.memory_space<vmem>>, vector<8x32xf32>
    tpu.vector_store %arg4[%c0_10, %c0_11], %27 {strides = array<i32>} : memref<8x32xf32, #tpu.memory_space<vmem>>, vector<8x32xf32>,
    return
  }
  func.func @transform_0(%arg0: i32) -> (i32, i32) {
    %c0_i32 = arith.constant 0 : i32
    %c0_i32_0 = arith.constant 0 : i32
    return %arg0, %c0_i32 : i32, i32
  }
  func.func @transform_1(%arg0: i32) -> (i32, i32) {
    %c0_i32 = arith.constant 0 : i32
    %c0_i32_0 = arith.constant 0 : i32
    %c0_i32_1 = arith.constant 0 : i32
    return %c0_i32, %c0_i32_0 : i32, i32
  }
  func.func @transform_2(%arg0: i32) -> (i32, i32) {
    %c0_i32 = arith.constant 0 : i32
    %c0_i32_0 = arith.constant 0 : i32
    %c0_i32_1 = arith.constant 0 : i32
    return %c0_i32, %c0_i32_0 : i32, i32
  }
  func.func @transform_3(%arg0: i32) -> (i32, i32) {
    %c0_i32 = arith.constant 0 : i32
    %c0_i32_0 = arith.constant 0 : i32
    return %arg0, %c0_i32 : i32, i32
  }
}

</mosaic_0001>

<bundles_post_ra>
// kernel: tpu_custom_call.1
= control target key start
LH: loop header
LB: loop body
LE: loop exit
PB: predicated region body
PF: predicated region fallthrough
CT: control target
= control target key end

     0   :  { %8 = vsyncpa [#allocation3], 0  ;;  %s648_s0 = inlined_call_operand.hbm [shape: f32[16,32], index: 0, kind: input, shape index: {}]   ;;  %s649_s1 = inlined_call_operand.vmem [shape: f32[1,32], index: 1, kind: input, shape index: {}]   ;;  %s650_s2 = inlined_call_operand.vmem [shape: f32[1,32], index: 2, kind: input, shape index: {}]   ;;  %s651_s3 = inlined_call_operand.hbm [shape: f32[16,32], index: 3, kind: output, shape index: {}]  }
   0x1   :  { %10 = vsyncpa [#allocation3 + $0x1], 0 }
   0x2   :  { %11 = vsyncpa [#allocation4], 0 }
   0x3   :  { %13 = vsyncpa [#allocation4 + $0x1], 0  ;;  %s494_s12 = smov 0   ;;  %s496_s13 = smov 0  }
   0x4   :  { %s498_s14 = smov 0   ;;  %s500_s15 = smov 0  }
   0x5 LB: > { %s515_s16 = sadd.s32 4294967295, %s470_s15   ;;  %s314_s17 = sadd.s32 4294967294, %s470_s15   ;;  %s470_s15 = sphi %s500_s15, %s668_s15   ;;  %s466_s14 = sphi %s498_s14, %s667_s14   ;;  %s462_s13 = sphi %s496_s13, %s666_s13   ;;  %s458_s12 = sphi %s494_s12, %s665_s12  }
   0x6   : > { %s519_s18 = sadd.s32 1, %s470_s15   ;;  %s26_s19 = sadd.s32 1, %s466_s14 }
   0x7   : > { %s23_s20 = ssub.s32 %s470_s15, %s519_s18  ;;  %p33_p0 = scmp.ne.s32.totalorder %s466_s14, %s462_s13 }
   0x8   : > { %p24_p1 = scmp.eq.s32.totalorder %s23_s20, 0  ;;  %p34_p2 = scmp.eq.s32.totalorder %s470_s15, 0 }
   0x9   : > { %p39_p3 = scmp.ne.s32.totalorder %s462_s13, %s458_s12  ;;  %p40_p4 = scmp.eq.s32.totalorder %s515_s16, 0 }
   0xa   : > { %s531_s21 = scalar_select %p24_p1, %s466_s14, %s26_s19  }
   0xb   : > { %p533_p5 = por %p34_p2, %p33_p0  ;;  %p537_p6 = por %p40_p4, %p39_p3 }
   0xc   : > { %p105_p7 = scmp.eq.s32.totalorder %s515_s16, 1  ;;  %p111_p8 = scmp.eq.s32.totalorder %s314_s17, 1 }
   0xd   : > { %s655_s23 = scalar_select %p537_p6, 1, 0 }
   0xe   : > { %p340_p10 = scmp.lt.s32.totalorder %s470_s15, 2  ;;  %p544_p11 = por %p105_p7, %p33_p0 }
   0xf   : > { %p548_p12 = por %p111_p8, %p39_p3  ;;  %s137_s26 = sand.u32 1, %s466_s14  }
  0x10   : > { %s656_s24 = scalar_select %p544_p11, 1, 0 }
  0x11   : > { %s657_s25 = scalar_select %p548_p12, 1, 0 }
  0x12   : > { %s318_s27 = sshll.u32 %s470_s15, 7  ;;  %s317_s28 = sshll.u32 %s137_s26, 3 }
  0x13   : > { %s557_s4 = scalar_lea.hbm %s648_s0, %s318_s27  ;;  %s141_s5 = scalar_lea.vmem [#allocation2], %s317_s28 }
  0x14   : > { %s148_s6 = sshll.u32 %s141_s5, 4  ;;  %p561_p13 = pnand %p340_p10, %p533_p5  ;;  %s565_s6 = int_to_ptr.vmem [resolvable:$true] %s148_s6 }
  0x15   : > { %s138_s8 = scalar_lea.sflag [#allocation3], %s137_s26  ;;  %s378_s9 = scalar_lea.hbm %s557_s4, 128 }
  0x16   : > { %p379_p2 = scmp.ne.s32.totalorder %s557_s4, %s378_s9  ;;  %p380_p3 = pneg %p561_p13 }
  0x17   : > { %s383_s17 = scalar_lea.hbm %s648_s0, 256  ;;  %p384_p5 = scmp.lt.s32.totalorder %s557_s4, %s648_s0 }
  0x18   : > { %p381_p4 = pnand %p380_p3, %p379_p2  ;;  %p385_p8 = scmp.lt.s32.totalorder %s383_s17, %s378_s9 }
  0x1a   : > { %p382_p7 = pneg %p381_p4  ;;  %p386_p10 = por %p385_p8, %p384_p5 }
  0x1c   : > { %p387_p9 = pnand %p386_p10, %p382_p7 }
  0x1e   : > { %390 = shalt.err (!%p387_p9)
}
  0x1f   : > { %s391_s22 = scalar_lea.vmem %s565_s6, 128  ;;  %s472_s26 = smov [#allocation2]  }
  0x20   : > { %p392_p0 = scmp.ne.s32.totalorder %s565_s6, %s391_s22  ;;  %s396_s27 = sshll.u32 %s472_s26, 4  ;;  %s397_s27 = int_to_ptr.vmem [resolvable:$false] %s396_s27 }
  0x21   : > { %s398_s28 = scalar_lea.vmem %s397_s27, 256  ;;  %p399_p4 = scmp.lt.s32.totalorder %s565_s6, %s397_s27 }
  0x22   : > { %p394_p1 = pnand %p392_p0, %p380_p3  ;;  %p400_p12 = scmp.lt.s32.totalorder %s398_s28, %s391_s22 }
  0x24   : > { %p395_p2 = pneg %p394_p1  ;;  %p401_p11 = por %p400_p12, %p399_p4 }
  0x26   : > { %p402_p6 = pnand %p401_p11, %p395_p2 }
  0x28   : > { %405 = shalt.err (!%p402_p6)
}
  0x29   : > { %335 = dma.hbm_to_vmem [thread:$0]  (!%p561_p13), %s557_s4, 128, %s565_s6, %s138_s8  }
  0x2a   : > { %p659_p9 = scmp.lt.s32.totalorder %s470_s15, 3  ;;  %p660_p7 = scmp.ge.s32.totalorder %s470_s15, 1 }
  0x2c   : > { %p154_p0 = pnand %p660_p7, %p659_p9 }
  0x2d   : > { %s592_s29 = sand.u32 (!%p154_p0), 1, %s462_s13   ;;  %p661_p6 = scmp.ne.s32.totalorder (!%p154_p0), %s655_s23, 0 }
  0x2e   : > { %157 = sbr.rel (%p154_p0) target bundleno = 398 (0x18e), region = 32  ;;  %s320_s30 = sshll.u32 (!%p154_p0), %s592_s29, 3 }
  0x2f   : > { %s160_s5 = scalar_lea.sflag (!%p154_p0), [#allocation3], %s592_s29  ;;  %s163_s7 = scalar_lea.vmem (!%p154_p0), [#allocation2], %s320_s30 }
  0x33   : > { %449 = dma.done.wait (%p661_p6), %s160_s5, 128  }
  0x34   : > { %451 = vsyncadd (%p661_p6), %s160_s5, 4294967168  ;;  %vm187_vm0 = vcmask 261120   ;;  %v186_v0 = vld [vmem:[%s163_s7] sm:$0xff]  ;;  %s325_s9 = sshll.u32 %s515_s16, 7  ;;  %s185_s10 = scalar_lea.vmem [#allocation5], %s320_s30 }
  0x35   : > { %v188_v1 = vsel %vm187_vm0, %v186_v0, 0.0  ;;  %v322_v19 = vld [vmem:[%s649_s1] ss:$0 sm:$0xff]  ;;  %s244_s11 = sshll.u32 %s185_s10, 4  ;;  %s242_s20 = scalar_lea.hbm %s651_s3, %s325_s9  ;;  %s245_s11 = int_to_ptr.vmem [resolvable:$true] %s244_s11 }
  0x36   : > { %189 = vadd.xlane.f32.xlu0 %v188_v1  ;;  %v323_v21 = vld [vmem:[%s650_s2] ss:$0 sm:$0xff]  ;;  %s231_s22 = scalar_lea.sflag [#allocation4], %s592_s29  ;;  %s406_s26 = scalar_lea.vmem %s245_s11, 128 }
  0x37   : > { %p407_p11 = scmp.ne.s32.totalorder %s245_s11, %s406_s26  ;;  %p662_p12 = scmp.ne.s32.totalorder %s656_s24, 0 }
  0x38   : > { %s473_s27 = smov [#allocation5]  }
  0x39   : > { %p408_p13 = pnand %p407_p11, %p662_p12  ;;  %s410_s16 = sshll.u32 %s473_s27, 4  ;;  %s411_s16 = int_to_ptr.vmem [resolvable:$false] %s410_s16 }
  0x3a   : > { %s412_s28 = scalar_lea.vmem %s411_s16, 256  ;;  %p413_p3 = scmp.lt.s32.totalorder %s245_s11, %s411_s16 }
  0x3b   : > { %p409_p1 = pneg %p408_p13  ;;  %p414_p5 = scmp.lt.s32.totalorder %s412_s28, %s406_s26 }
  0x3d   : > { %p415_p8 = por %p414_p5, %p413_p3 }
  0x3f   : > { %p416_p10 = pnand %p415_p8, %p409_p1 }
  0xbf   : > { %v190_v2 = vpop.xlane.xlu0 %189 }
  0xc0   : > { %v192_v3 = vmul.f32 0.03125, %v190_v2 }
  0xc2   : > { %v193_v4 = vsub.f32 %v186_v0, %v192_v3 }
  0xc4   : > { %v194_v5 = vmul.f32 %v193_v4, %v193_v4 }
  0xc6   : > { %v195_v6 = vsel %vm187_vm0, %v194_v5, 0.0 }
  0xc7   : > { %196 = vadd.xlane.f32.xlu0 %v195_v6 }
 0x150   : > { %v197_v7 = vpop.xlane.xlu0 %196 }
 0x151   : > { %v199_v8 = vmul.f32 0.032258064, %v197_v7 }
 0x153   : > { %374 = vrsqrt.f32 %v199_v8  ;;  %vm202_vm1 = vcmp.eq.f32.partialorder %v199_v8, inf  ;;  %v205_v11 = vand.u32 2147483648, %v199_v8  ;;  %vm204_vm2 = vcmp.eq.f32.partialorder %v199_v8, 0.0 }
 0x160   : > { %v375_v9 = vpop.eup %374 }
 0x161   : > { %v201_v10 = vmul.f32 %v375_v9, %v199_v8 }
 0x163   : > { %v203_v12 = vsel %vm202_vm1, %v199_v8, %v201_v10 }
 0x164   : > { %v206_v13 = vsel %vm204_vm2, %v205_v11, %v203_v12 }
 0x165   : > { %v207_v14 = vadd.f32 1e-06, %v206_v13 }
 0x167   : > { %376 = vrcp.f32 %v207_v14 }
 0x174   : > { %v377_v15 = vpop.eup %376 }
 0x175   : > { %v209_v16 = vmul.f32 %v377_v15, %v207_v14 }
 0x177   : > { %v210_v17 = vsub.f32 2.0, %v209_v16 }
 0x179   : > { %v211_v18 = vmul.f32 %v377_v15, %v210_v17 }
 0x17b   : > { %v213_v20 = vmul.f32 %v211_v18, %v193_v4 }
 0x17d   : > { %v220_v22 = vmul.f32 %v322_v19, %v213_v20 }
 0x17f   : > { %v228_v23 = vadd.f32 %v323_v21, %v220_v22 }
 0x181   : > { %229 = vst.msk [vmem:[%s185_s10] sm:$0xff] %vm187_vm0, %v228_v23 }
 0x182   : > { %419 = shalt.err (!%p416_p10)
}
 0x183   : > { %s420_s30 = scalar_lea.hbm %s242_s20, 128  ;;  %s424_s7 = scalar_lea.hbm %s651_s3, 256 }
 0x184   : > { %p421_p2 = scmp.ne.s32.totalorder %s242_s20, %s420_s30  ;;  %p425_p7 = scmp.lt.s32.totalorder %s242_s20, %s651_s3 }
 0x185   : > { %p426_p0 = scmp.lt.s32.totalorder %s424_s7, %s420_s30 }
 0x186   : > { %p422_p4 = pnand %p421_p2, %p662_p12 }
 0x187   : > { %p427_p6 = por %p426_p0, %p425_p7 }
 0x188   : > { %p423_p9 = pneg %p422_p4 }
 0x18a   : > { %p428_p11 = pnand %p427_p6, %p423_p9 }
 0x18c   : > { %431 = shalt.err (!%p428_p11)
}
 0x18d   : > { %330 = dma.vmem_to_hbm [thread:$0]  (%p662_p12), %s245_s11, 128, %s242_s20, %s231_s22  }
 0x18e PF: > { %s256_s6 = sand.u32 1, %s458_s12   ;;  %p663_p13 = scmp.ne.s32.totalorder %s657_s25, 0 }
 0x18f   : > { %p664_p1 = scmp.ge.s32.totalorder %s470_s15, 2  ;;  %s257_s8 = scalar_lea.sflag [#allocation4], %s256_s6 }
 0x191   : > { %p337_p3 = pnand %p664_p1, %p663_p13 }
 0x193   : > { %p338_p5 = pneg %p337_p3 }
 0x195   : > { %453 = dma.done.wait (%p338_p5), %s257_s8, 128  }
 0x196   : > { %455 = vsyncadd (%p338_p5), %s257_s8, 4294967168  ;;  %p16_p8 = scmp.ge.s32.totalorder %s519_s18, 4   ;;  %s665_s12 = smov %s462_s13 }
 0x197   : > { %s666_s13 = smov %s466_s14  ;;  %s667_s14 = smov %s531_s21 }
 0x198   : > { %s668_s15 = smov %s519_s18  ;;  %18 = sbr.rel (!%p16_p8) target bundleno = 5 (0x5), region = 77 }
 0x19d   :  { %262 = vsyncpa [#allocation3], 1 }
 0x19e   :  { %264 = vsyncpa [#allocation3 + $0x1], 1 }
 0x19f   :  { %265 = vsyncpa [#allocation4], 1 }
 0x1a0   :  { %267 = vsyncpa [#allocation4 + $0x1], 1 }

</bundles_post_ra>
